<compile_context>
chip_gen: v7x
topology: tpu7x:2x2x1
jax: 0.10.0
libtpu: 0.0.40
codegen_flags: <defaults>
</compile_context>

<pallas_src>
import functools

import jax
import jax.numpy as jnp
from jax.experimental import pallas as pl
from jax.experimental.pallas import tpu as pltpu


def _temporal_block_kernel(x_ref, w1_ref, b1_ref, w2_ref, b2_ref, *rest,
                           tile_t, pad, kernel_size, dilation, has_downsample):
    """One (batch, time-tile) grid step.

    x_ref  : (1, 1, C_in, tile_t + 2P)  halo window (time on lanes)
    w1_ref : (K, C_out, C_in)    w2_ref : (K, C_out, C_out)
    b*_ref : (C_out, 1)
    wd_ref : (C_out, C_in), bd_ref : (C_out, 1)    (only if has_downsample)
    o_ref  : (1, C_out, tile_t)
    h1_ref : (C_out, tile_t + P)  VMEM scratch (conv1 output incl. conv2 halo)
    """
    if has_downsample:
        wd_ref, bd_ref, o_ref, h1_ref = rest
    else:
        o_ref, h1_ref = rest

    K, d, P = kernel_size, dilation, pad
    Lh = tile_t + P  # conv1 output columns needed (tile + conv2 halo)

    # ---- conv1 (dilated causal) + bias + ReLU over tile_t + P columns -----
    acc1 = (jnp.dot(w1_ref[0], x_ref[0, 0, :, 0:Lh],
                    preferred_element_type=jnp.float32)
            + b1_ref[...].astype(jnp.float32))
    for k in range(1, K):                              # K is tiny & static
        acc1 = acc1 + jnp.dot(w1_ref[k], x_ref[0, 0, :, k * d:k * d + Lh],
                              preferred_element_type=jnp.float32)
    h1_ref[...] = jnp.maximum(acc1, 0.0).astype(h1_ref.dtype)
    # TODO(synk): dropout1 / dropout2 omitted (eval mode -> identity).

    if P > 0:
        # conv2's causal zero padding of h1: columns for t < 0 must be literal
        # zeros (not conv1 evaluated on zero-padded x).  Only the first time
        # tile of each batch item ever sees those columns.
        @pl.when(pl.program_id(1) == 0)
        def _():
            h1_ref[:, 0:P] = jnp.zeros((h1_ref.shape[0], P), h1_ref.dtype)

    # ---- conv2 (dilated causal) + bias + ReLU over tile_t columns ---------
    acc2 = (jnp.dot(w2_ref[0], h1_ref[:, 0:tile_t],
                    preferred_element_type=jnp.float32)
            + b2_ref[...].astype(jnp.float32))
    for k in range(1, K):
        acc2 = acc2 + jnp.dot(w2_ref[k], h1_ref[:, k * d:k * d + tile_t],
                              preferred_element_type=jnp.float32)
    h2 = jnp.maximum(acc2, 0.0)

    # ---- residual branch + final ReLU --------------------------------------
    x_res = x_ref[0, 0, :, 2 * P:2 * P + tile_t]       # the un-shifted x tile
    if has_downsample:
        res = (jnp.dot(wd_ref[...], x_res, preferred_element_type=jnp.float32)
               + bd_ref[...].astype(jnp.float32))
    else:
        res = x_res.astype(jnp.float32)                # identity residual

    o_ref[0] = jnp.maximum(h2 + res, 0.0).astype(o_ref.dtype)


def _pick_time_tile(T, P, max_time_tile):
    if T <= max_time_tile:
        return T
    tile = (max_time_tile // 128) * 128
    tile = max(tile, ((P + 127) // 128) * 128)   # halo must fit inside one tile
    return min(tile, T)


def temporal_block_forward(x, params, *, kernel_size, stride, dilation, padding,
                           max_time_tile=1024):
    """x: (B, n_inputs, T)  ->  (B, n_outputs, T).  TemporalBlock.forward (eval)."""
    assert stride == 1, "TemporalBlock residual add requires stride == 1"
    assert padding == (kernel_size - 1) * dilation, "causal padding expected"

    B, c_in, T = x.shape
    w1, w2 = params["w1"], params["w2"]
    b1, b2 = params["b1"], params["b2"]
    wd, bd = params.get("wd"), params.get("bd")
    has_downsample = wd is not None
    c_out = w1.shape[1]
    P = padding
    dtype = x.dtype
    itemsize = jnp.dtype(dtype).itemsize

    tile_t = _pick_time_tile(T, P, max_time_tile)
    n_t = pl.cdiv(T, tile_t)
    T_pad = n_t * tile_t
    L = tile_t + 2 * P

    # Host prep: causal left zero-pad (2P = conv1 + conv2 reach) plus right pad
    # to a whole number of tiles, then gather overlapping halo windows so every
    # (batch, time-tile) grid step is fully independent (both axes "parallel").
    xr = jnp.pad(x, ((0, 0), (0, 0), (2 * P, T_pad - T)))
    col = (jnp.arange(n_t) * tile_t)[:, None] + jnp.arange(L)[None, :]
    slab = jnp.swapaxes(xr[:, :, col], 1, 2)                 # (B, n_t, C_in, L)

    kern = functools.partial(
        _temporal_block_kernel, tile_t=tile_t, pad=P, kernel_size=kernel_size,
        dilation=dilation, has_downsample=has_downsample)

    inputs = [slab, w1, b1, w2, b2]
    in_specs = [
        # per-(batch, tile) halo window, auto double-buffered across the grid
        pl.BlockSpec((1, 1, c_in, L), lambda b, i: (b, i, 0, 0)),
        # weights / biases: constant index_maps -> VMEM-resident
        pl.BlockSpec(w1.shape, lambda b, i: (0, 0, 0)),
        pl.BlockSpec(b1.shape, lambda b, i: (0, 0)),
        pl.BlockSpec(w2.shape, lambda b, i: (0, 0, 0)),
        pl.BlockSpec(b2.shape, lambda b, i: (0, 0)),
    ]
    if has_downsample:
        inputs += [wd, bd]
        in_specs += [pl.BlockSpec(wd.shape, lambda b, i: (0, 0)),
                     pl.BlockSpec(bd.shape, lambda b, i: (0, 0))]

    weight_bytes = sum(int(a.size) * a.dtype.itemsize for a in inputs[1:])
    # per-step VMEM: double-buffered in/out tiles + scratch + live f32 values
    step_bytes = (2 * c_in * L * itemsize + 2 * c_out * tile_t * itemsize
                  + c_out * (tile_t + P) * itemsize
                  + 4 * c_out * (tile_t + P) * 4
                  + weight_bytes)
    vmem_limit = int(min(48 * 2**20, max(16 * 2**20, 4 * step_bytes)))

    flops = 2 * B * T_pad * kernel_size * c_out * (c_in + c_out)
    if has_downsample:
        flops += 2 * B * T_pad * c_in * c_out
    bytes_accessed = (int(slab.size) * itemsize + B * T_pad * c_out * itemsize
                      + weight_bytes)

    out = pl.pallas_call(
        kern,
        out_shape=jax.ShapeDtypeStruct((B, c_out, T_pad), dtype),
        grid=(B, n_t),
        in_specs=in_specs,
        out_specs=pl.BlockSpec((1, c_out, tile_t), lambda b, i: (b, 0, i)),
        scratch_shapes=[pltpu.VMEM((c_out, tile_t + P), dtype)],
        compiler_params=pltpu.CompilerParams(
            dimension_semantics=("parallel", "parallel"),
            vmem_limit_bytes=vmem_limit),
        cost_estimate=pl.CostEstimate(flops=int(flops), transcendentals=0,
                                      bytes_accessed=int(bytes_accessed)),
    )(*inputs)

    return out[:, :, :T] if T_pad != T else out


def init_temporal_block_params(key, n_inputs, n_outputs, kernel_size):
    """Returns (kernel-layout params, torch-layout params) with weight_norm folded."""
    k1, k2, k3, kg1, kg2, kb1, kb2, kbd = jax.random.split(key, 8)

    # weight_norm parameterisation: w = g * v / ||v|| (norm over (in, k) per out ch)
    v1 = 0.01 * jax.random.normal(k1, (n_outputs, n_inputs, kernel_size), jnp.float32)
    v2 = 0.01 * jax.random.normal(k2, (n_outputs, n_outputs, kernel_size), jnp.float32)
    g1 = jnp.linalg.norm(v1.reshape(n_outputs, -1), axis=1) * \
        (1.0 + 0.25 * jax.random.uniform(kg1, (n_outputs,)))
    g2 = jnp.linalg.norm(v2.reshape(n_outputs, -1), axis=1) * \
        (1.0 + 0.25 * jax.random.uniform(kg2, (n_outputs,)))

    def fold(v, g):
        norm = jnp.linalg.norm(v.reshape(v.shape[0], -1), axis=1)
        return (g / norm)[:, None, None] * v             # (C_out, C_in, K) torch layout

    w1_t, w2_t = fold(v1, g1), fold(v2, g2)
    b1_t = 0.1 * jax.random.uniform(kb1, (n_outputs,), jnp.float32, -1.0, 1.0)
    b2_t = 0.1 * jax.random.uniform(kb2, (n_outputs,), jnp.float32, -1.0, 1.0)

    params_kernel = {
        "w1": jnp.transpose(w1_t, (2, 0, 1)),             # (K, C_out, C_in)
        "w2": jnp.transpose(w2_t, (2, 0, 1)),             # (K, C_out, C_out)
        "b1": b1_t[:, None], "b2": b2_t[:, None],         # (C_out, 1)
        "wd": None, "bd": None,
    }
    params_torch = {"w1": w1_t, "w2": w2_t, "b1": b1_t, "b2": b2_t,
                    "wd": None, "bd": None}

    if n_inputs != n_outputs:                              # downsample 1x1 conv
        wd_t = 0.01 * jax.random.normal(k3, (n_outputs, n_inputs, 1), jnp.float32)
        bd_t = 0.1 * jax.random.uniform(kbd, (n_outputs,), jnp.float32, -1.0, 1.0)
        params_kernel["wd"] = wd_t[:, :, 0]                # (C_out, C_in)
        params_kernel["bd"] = bd_t[:, None]                # (C_out, 1)
        params_torch["wd"], params_torch["bd"] = wd_t, bd_t

    return params_kernel, params_torch


def _reference(x, p, *, kernel_size, stride, dilation, padding):
    """Pure-JAX mirror of TemporalBlock.forward (eval mode), torch conv layout."""
    def conv(inp, w, b, dil, pad):
        out = jax.lax.conv_general_dilated(
            inp, w, window_strides=(stride,), padding=[(pad, pad)],
            rhs_dilation=(dil,), dimension_numbers=("NCH", "OIH", "NCH"))
        return out + b[None, :, None]

    h = conv(x, p["w1"], p["b1"], dilation, padding)
    h = h[:, :, :-padding] if padding > 0 else h           # Chomp1d
    h = jnp.maximum(h, 0.0)                                 # relu1 (dropout = id)
    h = conv(h, p["w2"], p["b2"], dilation, padding)
    h = h[:, :, :-padding] if padding > 0 else h
    h = jnp.maximum(h, 0.0)                                 # relu2
    res = x if p["wd"] is None else conv(x, p["wd"], p["bd"], 1, 0)
    return jnp.maximum(h + res, 0.0)                        # final relu


if __name__ == "__main__":
    key = jax.random.PRNGKey(0)
    cases = [
        # (batch, n_in, n_out, T, K, dilation)  -> exercises the downsample branch
        (2, 4, 32, 16, 3, 1),
        # equal channels -> identity-residual branch, dilation 2
        (2, 32, 32, 16, 3, 2),
    ]
    for idx, (B, c_in, c_out, T, K, d) in enumerate(cases):
        kx, kp, key = jax.random.split(key, 3)
        pad = (K - 1) * d
        x = jax.random.normal(kx, (B, c_in, T), jnp.float32)
        p_kern, p_torch = init_temporal_block_params(kp, c_in, c_out, K)

        out = temporal_block_forward(x, p_kern, kernel_size=K, stride=1,
                                     dilation=d, padding=pad)
        out = jax.block_until_ready(out)

        ref = _reference(x, p_torch, kernel_size=K, stride=1, dilation=d,
                         padding=pad)
        assert out.shape == (B, c_out, T)
        err = float(jnp.max(jnp.abs(out - ref)))
        assert jnp.allclose(out, ref, atol=1e-4, rtol=1e-4), (idx, err)

    print("KERNEL_OK")
</pallas_src>

<mosaic_0001>
module attributes {stable_mosaic.version = 11 : i64} {
  func.func @_temporal_block_kernel(%arg0: i32, %arg1: i32, %arg2: memref<1x1x4x20xf32, #tpu.memory_space<vmem>>, %arg3: memref<3x32x4xf32, #tpu.memory_space<vmem>>, %arg4: memref<32x1xf32, #tpu.memory_space<vmem>>, %arg5: memref<3x32x32xf32, #tpu.memory_space<vmem>>, %arg6: memref<32x1xf32, #tpu.memory_space<vmem>>, %arg7: memref<32x4xf32, #tpu.memory_space<vmem>>, %arg8: memref<32x1xf32, #tpu.memory_space<vmem>>, %arg9: memref<1x32x16xf32, #tpu.memory_space<vmem>>, %arg10: memref<32x18xf32, #tpu.memory_space<vmem>>) attributes {dimension_semantics = [#tpu.dimension_semantics<parallel>, #tpu.dimension_semantics<parallel>], iteration_bounds = array<i64: 2, 1>, scalar_prefetch = 0 : i64, scratch_operands = 1 : i64, tpu.core_type = #tpu.core_type<tc>, window_params = [{transform_indices = @transform_0, window_bounds = array<i64: 1, 1, 4, 20>}, {pipeline_mode = #tpu.pipeline_mode<synchronous>, transform_indices = @transform_1, window_bounds = array<i64: 3, 32, 4>}, {pipeline_mode = #tpu.pipeline_mode<synchronous>, transform_indices = @transform_2, window_bounds = array<i64: 32, 1>}, {pipeline_mode = #tpu.pipeline_mode<synchronous>, transform_indices = @transform_3, window_bounds = array<i64: 3, 32, 32>}, {pipeline_mode = #tpu.pipeline_mode<synchronous>, transform_indices = @transform_4, window_bounds = array<i64: 32, 1>}, {pipeline_mode = #tpu.pipeline_mode<synchronous>, transform_indices = @transform_5, window_bounds = array<i64: 32, 4>}, {pipeline_mode = #tpu.pipeline_mode<synchronous>, transform_indices = @transform_6, window_bounds = array<i64: 32, 1>}, {transform_indices = @transform_7, window_bounds = array<i64: 1, 32, 16>}]} {
    %c0 = arith.constant 0 : index
    %c0_0 = arith.constant 0 : index
    %c0_1 = arith.constant 0 : index
    %0 = vector.load %arg3[%c0, %c0_0, %c0_1] : memref<3x32x4xf32, #tpu.memory_space<vmem>>, vector<1x32x4xf32>
    %1 = vector.shape_cast %0 : vector<1x32x4xf32> to vector<32x4xf32>
    %c0_2 = arith.constant 0 : index
    %c0_3 = arith.constant 0 : index
    %c0_4 = arith.constant 0 : index
    %c0_5 = arith.constant 0 : index
    %2 = vector.load %arg2[%c0_2, %c0_3, %c0_4, %c0_5] : memref<1x1x4x20xf32, #tpu.memory_space<vmem>>, vector<1x1x4x18xf32>
    %3 = vector.shape_cast %2 : vector<1x1x4x18xf32> to vector<4x18xf32>
    %cst = arith.constant dense<0.000000e+00> : vector<32x18xf32>
    %4 = tpu.matmul %1, %3, %cst {dimension_numbers = #tpu.dot_dimension_numbers<[1], [0], [0], [1], [0, 0, 1, 1], [], []>} : vector<32x4xf32>, vector<4x18xf32>, vector<32x18xf32> -> vector<32x18xf32>
    %c0_6 = arith.constant 0 : index
    %c0_7 = arith.constant 0 : index
    %5 = vector.load %arg4[%c0_6, %c0_7] : memref<32x1xf32, #tpu.memory_space<vmem>>, vector<32x1xf32>
    %6 = vector.broadcast %5 : vector<32x1xf32> to vector<32x18xf32>
    %7 = arith.addf %4, %6 : vector<32x18xf32>
    %c1 = arith.constant 1 : index
    %c0_8 = arith.constant 0 : index
    %c0_9 = arith.constant 0 : index
    %8 = vector.load %arg3[%c1, %c0_8, %c0_9] : memref<3x32x4xf32, #tpu.memory_space<vmem>>, vector<1x32x4xf32>
    %9 = vector.shape_cast %8 : vector<1x32x4xf32> to vector<32x4xf32>
    %c0_10 = arith.constant 0 : index
    %c0_11 = arith.constant 0 : index
    %c0_12 = arith.constant 0 : index
    %c1_13 = arith.constant 1 : index
    %10 = vector.load %arg2[%c0_10, %c0_11, %c0_12, %c1_13] : memref<1x1x4x20xf32, #tpu.memory_space<vmem>>, vector<1x1x4x18xf32>
    %11 = vector.shape_cast %10 : vector<1x1x4x18xf32> to vector<4x18xf32>
    %cst_14 = arith.constant dense<0.000000e+00> : vector<32x18xf32>
    %12 = tpu.matmul %9, %11, %cst_14 {dimension_numbers = #tpu.dot_dimension_numbers<[1], [0], [0], [1], [0, 0, 1, 1], [], []>} : vector<32x4xf32>, vector<4x18xf32>, vector<32x18xf32> -> vector<32x18xf32>
    %13 = arith.addf %7, %12 : vector<32x18xf32>
    %c2 = arith.constant 2 : index
    %c0_15 = arith.constant 0 : index
    %c0_16 = arith.constant 0 : index
    %14 = vector.load %arg3[%c2, %c0_15, %c0_16] : memref<3x32x4xf32, #tpu.memory_space<vmem>>, vector<1x32x4xf32>
    %15 = vector.shape_cast %14 : vector<1x32x4xf32> to vector<32x4xf32>
    %c0_17 = arith.constant 0 : index
    %c0_18 = arith.constant 0 : index
    %c0_19 = arith.constant 0 : index
    %c2_20 = arith.constant 2 : index
    %16 = vector.load %arg2[%c0_17, %c0_18, %c0_19, %c2_20] : memref<1x1x4x20xf32, #tpu.memory_space<vmem>>, vector<1x1x4x18xf32>
    %17 = vector.shape_cast %16 : vector<1x1x4x18xf32> to vector<4x18xf32>
    %cst_21 = arith.constant dense<0.000000e+00> : vector<32x18xf32>
    %18 = tpu.matmul %15, %17, %cst_21 {dimension_numbers = #tpu.dot_dimension_numbers<[1], [0], [0], [1], [0, 0, 1, 1], [], []>} : vector<32x4xf32>, vector<4x18xf32>, vector<32x18xf32> -> vector<32x18xf32>
    %19 = arith.addf %13, %18 : vector<32x18xf32>
    %cst_22 = arith.constant 0.000000e+00 : f32
    %20 = vector.broadcast %cst_22 : f32 to vector<32x18xf32>
    %21 = arith.maximumf %19, %20 : vector<32x18xf32>
    %c0_23 = arith.constant 0 : index
    %c0_24 = arith.constant 0 : index
    %22 = vector.load %arg10[%c0_23, %c0_24] : memref<32x18xf32, #tpu.memory_space<vmem>>, vector<32x18xf32>
    tpu.vector_store %arg10[%c0_23, %c0_24], %21 {strides = array<i32>} : memref<32x18xf32, #tpu.memory_space<vmem>>, vector<32x18xf32>,
    %c0_i32 = arith.constant 0 : i32
    %23 = arith.cmpi eq, %arg1, %c0_i32 : i32
    %24 = arith.extui %23 : i1 to i32
    %c0_i32_25 = arith.constant 0 : i32
    %25 = arith.cmpi ne, %24, %c0_i32_25 : i32
    scf.if %25 {
      %cst_59 = arith.constant 0.000000e+00 : f32
      %58 = vector.broadcast %cst_59 : f32 to vector<32x2xf32>
      %c0_60 = arith.constant 0 : index
      %c0_61 = arith.constant 0 : index
      %59 = vector.load %arg10[%c0_60, %c0_61] : memref<32x18xf32, #tpu.memory_space<vmem>>, vector<32x2xf32>
      tpu.vector_store %arg10[%c0_60, %c0_61], %58 {strides = array<i32>} : memref<32x18xf32, #tpu.memory_space<vmem>>, vector<32x2xf32>,
    } else {
    }
    %c0_26 = arith.constant 0 : index
    %c0_27 = arith.constant 0 : index
    %c0_28 = arith.constant 0 : index
    %26 = vector.load %arg5[%c0_26, %c0_27, %c0_28] : memref<3x32x32xf32, #tpu.memory_space<vmem>>, vector<1x32x32xf32>
    %27 = vector.shape_cast %26 : vector<1x32x32xf32> to vector<32x32xf32>
    %c0_29 = arith.constant 0 : index
    %c0_30 = arith.constant 0 : index
    %28 = vector.load %arg10[%c0_29, %c0_30] : memref<32x18xf32, #tpu.memory_space<vmem>>, vector<32x16xf32>
    %cst_31 = arith.constant dense<0.000000e+00> : vector<32x16xf32>
    %29 = tpu.matmul %27, %28, %cst_31 {dimension_numbers = #tpu.dot_dimension_numbers<[1], [0], [0], [1], [0, 0, 1, 1], [], []>} : vector<32x32xf32>, vector<32x16xf32>, vector<32x16xf32> -> vector<32x16xf32>
    %c0_32 = arith.constant 0 : index
    %c0_33 = arith.constant 0 : index
    %30 = vector.load %arg6[%c0_32, %c0_33] : memref<32x1xf32, #tpu.memory_space<vmem>>, vector<32x1xf32>
    %31 = vector.broadcast %30 : vector<32x1xf32> to vector<32x16xf32>
    %32 = arith.addf %29, %31 : vector<32x16xf32>
    %c1_34 = arith.constant 1 : index
    %c0_35 = arith.constant 0 : index
    %c0_36 = arith.constant 0 : index
    %33 = vector.load %arg5[%c1_34, %c0_35, %c0_36] : memref<3x32x32xf32, #tpu.memory_space<vmem>>, vector<1x32x32xf32>
    %34 = vector.shape_cast %33 : vector<1x32x32xf32> to vector<32x32xf32>
    %c0_37 = arith.constant 0 : index
    %c1_38 = arith.constant 1 : index
    %35 = vector.load %arg10[%c0_37, %c1_38] : memref<32x18xf32, #tpu.memory_space<vmem>>, vector<32x16xf32>
    %cst_39 = arith.constant dense<0.000000e+00> : vector<32x16xf32>
    %36 = tpu.matmul %34, %35, %cst_39 {dimension_numbers = #tpu.dot_dimension_numbers<[1], [0], [0], [1], [0, 0, 1, 1], [], []>} : vector<32x32xf32>, vector<32x16xf32>, vector<32x16xf32> -> vector<32x16xf32>
    %37 = arith.addf %32, %36 : vector<32x16xf32>
    %c2_40 = arith.constant 2 : index
    %c0_41 = arith.constant 0 : index
    %c0_42 = arith.constant 0 : index
    %38 = vector.load %arg5[%c2_40, %c0_41, %c0_42] : memref<3x32x32xf32, #tpu.memory_space<vmem>>, vector<1x32x32xf32>
    %39 = vector.shape_cast %38 : vector<1x32x32xf32> to vector<32x32xf32>
    %c0_43 = arith.constant 0 : index
    %c2_44 = arith.constant 2 : index
    %40 = vector.load %arg10[%c0_43, %c2_44] : memref<32x18xf32, #tpu.memory_space<vmem>>, vector<32x16xf32>
    %cst_45 = arith.constant dense<0.000000e+00> : vector<32x16xf32>
    %41 = tpu.matmul %39, %40, %cst_45 {dimension_numbers = #tpu.dot_dimension_numbers<[1], [0], [0], [1], [0, 0, 1, 1], [], []>} : vector<32x32xf32>, vector<32x16xf32>, vector<32x16xf32> -> vector<32x16xf32>
    %42 = arith.addf %37, %41 : vector<32x16xf32>
    %cst_46 = arith.constant 0.000000e+00 : f32
    %43 = vector.broadcast %cst_46 : f32 to vector<32x16xf32>
    %44 = arith.maximumf %42, %43 : vector<32x16xf32>
    %c0_47 = arith.constant 0 : index
    %c0_48 = arith.constant 0 : index
    %c0_49 = arith.constant 0 : index
    %c4 = arith.constant 4 : index
    %45 = vector.load %arg2[%c0_47, %c0_48, %c0_49, %c4] : memref<1x1x4x20xf32, #tpu.memory_space<vmem>>, vector<1x1x4x16xf32>
    %46 = vector.shape_cast %45 : vector<1x1x4x16xf32> to vector<4x16xf32>
    %c0_50 = arith.constant 0 : index
    %c0_51 = arith.constant 0 : index
    %47 = vector.load %arg7[%c0_50, %c0_51] : memref<32x4xf32, #tpu.memory_space<vmem>>, vector<32x4xf32>
    %cst_52 = arith.constant dense<0.000000e+00> : vector<32x16xf32>
    %48 = tpu.matmul %47, %46, %cst_52 {dimension_numbers = #tpu.dot_dimension_numbers<[1], [0], [0], [1], [0, 0, 1, 1], [], []>} : vector<32x4xf32>, vector<4x16xf32>, vector<32x16xf32> -> vector<32x16xf32>
    %c0_53 = arith.constant 0 : index
    %c0_54 = arith.constant 0 : index
    %49 = vector.load %arg8[%c0_53, %c0_54] : memref<32x1xf32, #tpu.memory_space<vmem>>, vector<32x1xf32>
    %50 = vector.broadcast %49 : vector<32x1xf32> to vector<32x16xf32>
    %51 = arith.addf %48, %50 : vector<32x16xf32>
    %52 = arith.addf %44, %51 : vector<32x16xf32>
    %cst_55 = arith.constant 0.000000e+00 : f32
    %53 = vector.broadcast %cst_55 : f32 to vector<32x16xf32>
    %54 = arith.maximumf %52, %53 : vector<32x16xf32>
    %c0_56 = arith.constant 0 : index
    %c0_57 = arith.constant 0 : index
    %c0_58 = arith.constant 0 : index
    %55 = vector.load %arg9[%c0_56, %c0_57, %c0_58] : memref<1x32x16xf32, #tpu.memory_space<vmem>>, vector<1x32x16xf32>
    %56 = vector.shape_cast %55 : vector<1x32x16xf32> to vector<32x16xf32>
    %57 = vector.shape_cast %54 : vector<32x16xf32> to vector<1x32x16xf32>
    tpu.vector_store %arg9[%c0_56, %c0_57, %c0_58], %57 {strides = array<i32>} : memref<1x32x16xf32, #tpu.memory_space<vmem>>, vector<1x32x16xf32>,
    return
  }
  func.func @transform_0(%arg0: i32, %arg1: i32) -> (i32, i32, i32, i32) {
    %c0_i32 = arith.constant 0 : i32
    %c0_i32_0 = arith.constant 0 : i32
    %c0_i32_1 = arith.constant 0 : i32
    return %arg0, %arg1, %c0_i32, %c0_i32_0 : i32, i32, i32, i32
  }
  func.func @transform_1(%arg0: i32, %arg1: i32) -> (i32, i32, i32) {
    %c0_i32 = arith.constant 0 : i32
    %c0_i32_0 = arith.constant 0 : i32
    %c0_i32_1 = arith.constant 0 : i32
    %c0_i32_2 = arith.constant 0 : i32
    return %c0_i32, %c0_i32_0, %c0_i32_1 : i32, i32, i32
  }
  func.func @transform_2(%arg0: i32, %arg1: i32) -> (i32, i32) {
    %c0_i32 = arith.constant 0 : i32
    %c0_i32_0 = arith.constant 0 : i32
    %c0_i32_1 = arith.constant 0 : i32
    return %c0_i32, %c0_i32_0 : i32, i32
  }
  func.func @transform_3(%arg0: i32, %arg1: i32) -> (i32, i32, i32) {
    %c0_i32 = arith.constant 0 : i32
    %c0_i32_0 = arith.constant 0 : i32
    %c0_i32_1 = arith.constant 0 : i32
    %c0_i32_2 = arith.constant 0 : i32
    return %c0_i32, %c0_i32_0, %c0_i32_1 : i32, i32, i32
  }
  func.func @transform_4(%arg0: i32, %arg1: i32) -> (i32, i32) {
    %c0_i32 = arith.constant 0 : i32
    %c0_i32_0 = arith.constant 0 : i32
    %c0_i32_1 = arith.constant 0 : i32
    return %c0_i32, %c0_i32_0 : i32, i32
  }
  func.func @transform_5(%arg0: i32, %arg1: i32) -> (i32, i32) {
    %c0_i32 = arith.constant 0 : i32
    %c0_i32_0 = arith.constant 0 : i32
    %c0_i32_1 = arith.constant 0 : i32
    return %c0_i32, %c0_i32_0 : i32, i32
  }
  func.func @transform_6(%arg0: i32, %arg1: i32) -> (i32, i32) {
    %c0_i32 = arith.constant 0 : i32
    %c0_i32_0 = arith.constant 0 : i32
    %c0_i32_1 = arith.constant 0 : i32
    return %c0_i32, %c0_i32_0 : i32, i32
  }
  func.func @transform_7(%arg0: i32, %arg1: i32) -> (i32, i32, i32) {
    %c0_i32 = arith.constant 0 : i32
    %c0_i32_0 = arith.constant 0 : i32
    return %arg0, %c0_i32, %arg1 : i32, i32, i32
  }
}

</mosaic_0001>

<bundles_post_ra>
// kernel: tpu_custom_call.1
= control target key start
LH: loop header
LB: loop body
LE: loop exit
PB: predicated region body
PF: predicated region fallthrough
CT: control target
= control target key end

     0   :  { %s1619_s24 = smov 0   ;;  %s1621_s25 = smov 0   ;;  %s1834_s0 = inlined_call_operand.vmem [shape: f32[2,1,4,20], index: 0, kind: input, shape index: {}]   ;;  %s1835_s1 = inlined_call_operand.vmem [shape: f32[3,32,4], index: 1, kind: input, shape index: {}]   ;;  %s1836_s2 = inlined_call_operand.vmem [shape: f32[32,1], index: 2, kind: input, shape index: {}]   ;;  %s1837_s3 = inlined_call_operand.vmem [shape: f32[3,32,32], index: 3, kind: input, shape index: {}]   ;;  %s1838_s4 = inlined_call_operand.vmem [shape: f32[32,1], index: 4, kind: input, shape index: {}]   ;;  %s1839_s5 = inlined_call_operand.vmem [shape: f32[32,4], index: 5, kind: input, shape index: {}]   ;;  %s1840_s6 = inlined_call_operand.vmem [shape: f32[32,1], index: 6, kind: input, shape index: {}]   ;;  %s1841_s7 = inlined_call_operand.vmem [shape: f32[2,32,16], index: 7, kind: output, shape index: {}]  }
   0x1   :  { %s1623_s26 = smov 0  }
   0x2 LB: > { %s29_s27 = sadd.s32 1, %s1568_s25  ;;  %p1278_p0 = scmp.ge.s32.totalorder %s1572_s26, 1  ;;  %s1572_s26 = sphi %s1623_s26, %s17_s26   ;;  %s1568_s25 = sphi %s1621_s25, %s1843_s25   ;;  %s1564_s24 = sphi %s1619_s24, %s1842_s24  }
   0x3   : > { %p31_p1 = scmp.ge.s32.totalorder %s29_s27, 2  ;;  %p255_p2 = scmp.lt.s32.totalorder %s1572_s26, 3 }
   0x5   : > { %s1845_s27 = smov (%p31_p1, %s29_s27), 0  ;;  %p256_p3 = pnand %p1278_p0, %p255_p2 }
   0x6   : > { %p292_p4 = scmp.lt.s32.totalorder (!%p256_p3), %s1564_s24, 1  ;;  %v307_v0 = vld [vmem:[%s1835_s1] sm:$0xff] (!%p256_p3)  ;;  %vm336_vm0 = vcmask (!%p256_p3), 31744   ;;  %vm349_vm1 = vcmask (!%p256_p3), 1043456   ;;  %v308_v2 = vld [vmem:[%s1835_s1 + $0x8] sm:$0xff] (!%p256_p3)  ;;  %s1574_s13 = smov (!%p256_p3), 127  }
   0x7   : > { %259 = sbr.rel (%p256_p3) target bundleno = 733 (0x2dd), region = 48  ;;  %1379 = vmatprep.mubr.msk.f32.mxu0 (!%p256_p3), %vm336_vm0, %v307_v0  ;;  %v309_v3 = vld [vmem:[%s1835_s1 + $0x10] sm:$0xff] (!%p256_p3)  ;;  %v312_v4 = vld [vmem:[%s1836_s2] sm:$0xff] (!%p256_p3)  ;;  %v1575_v5 = vmov (!%p256_p3), 0   ;;  %v310_v6 = vld [vmem:[%s1835_s1 + $0x18] sm:$0xff] (!%p256_p3)  ;;  %s1576_s20 = smov (!%p256_p3), 126  }
   0x8   : > { %1528 = vset.pattern.permute.xlu1 (!%p256_p3), %v1575_v5  ;;  %v1287_v7 = vld [vmem:[%s1835_s1 + $0x20] sm:$0xff] (!%p256_p3)  ;;  %v313_v8 = vld [vmem:[%s1836_s2 + $0x8] sm:$0xff] (!%p256_p3)  ;;  %1529 = vset.pattern.permute.xlu0 (!%p256_p3), %v1575_v5  ;;  %v314_v9 = vld [vmem:[%s1836_s2 + $0x10] sm:$0xff] (!%p256_p3)  ;;  %vm662_vm2 = vcmask (!%p256_p3), 146432   ;;  %vm671_vm3 = vcmask (!%p256_p3), 15360   ;;  %v1577_v33 = vmov (!%p256_p3), 0.0  }
   0x9   : > { %318 = vperm.xlu1 (!%p256_p3), %1528, %v312_v4   ;;  %v315_v10 = vld [vmem:[%s1836_s2 + $0x18] sm:$0xff] (!%p256_p3)  ;;  %v1288_v12 = vld [vmem:[%s1835_s1 + $0x28] sm:$0xff] (!%p256_p3)  ;;  %v1289_v13 = vld [vmem:[%s1835_s1 + $0x30] sm:$0xff] (!%p256_p3)  ;;  %vm708_vm4 = vcmask (!%p256_p3), 261120   ;;  %s1578_s18 = smov (!%p256_p3), 124   ;;  %vm1189_vm5 = vcmask (!%p256_p3), 130048  }
   0xa   : > { %v1290_v15 = vld [vmem:[%s1835_s1 + $0x38] sm:$0xff] (!%p256_p3)  ;;  %v1296_v16 = vld [vmem:[%s1835_s1 + $0x40] sm:$0xff] (!%p256_p3)  ;;  %v1297_v17 = vld [vmem:[%s1835_s1 + $0x48] sm:$0xff] (!%p256_p3) }
   0xb   : > { %v1298_v18 = vld [vmem:[%s1835_s1 + $0x50] sm:$0xff] (!%p256_p3)  ;;  %v1299_v19 = vld [vmem:[%s1835_s1 + $0x58] sm:$0xff] (!%p256_p3)  ;;  %v676_v35 = vld [vmem:[%s1837_s3] sm:$0xff] (!%p256_p3) }
   0xc   : > { %1409 = vmatprep.mubr.msk.f32.mxu1 (!%p256_p3), %vm708_vm4, %v676_v35  ;;  %v1051_v38 = vld [vmem:[%s1839_s5] sm:$0xff] (!%p256_p3)  ;;  %v677_v48 = vld [vmem:[%s1837_s3 + $0x8] sm:$0xff] (!%p256_p3)  ;;  %v678_v49 = vld [vmem:[%s1837_s3 + $0x10] sm:$0xff] (!%p256_p3) }
   0xd   : > { %323 = vperm.xlu1 (!%p256_p3), %1528, %v313_v8   ;;  %v685_v50 = vld [vmem:[%s1838_s4 + $0x8] sm:$0xff] (!%p256_p3)  ;;  %v684_v51 = vld [vmem:[%s1838_s4] sm:$0xff] (!%p256_p3)  ;;  %v679_v52 = vld [vmem:[%s1837_s3 + $0x18] sm:$0xff] (!%p256_p3) }
   0xe   : > { %s1847_s24 = smov (!%p292_p4, %s1564_s24), 1  ;;  %v1309_v53 = vld [vmem:[%s1837_s3 + $0x20] sm:$0xff]  ;;  %v687_v54 = vld [vmem:[%s1838_s4 + $0x18] sm:$0xff]  ;;  %v686_v55 = vld [vmem:[%s1838_s4 + $0x10] sm:$0xff] }
   0xf   : > { %s1279_s30 = sshll.u32 %s1847_s24, 2  ;;  %v1056_v56 = vld [vmem:[%s1840_s6 + $0x8] sm:$0xff]  ;;  %v1055_v57 = vld [vmem:[%s1840_s6] sm:$0xff]  ;;  %v1058_v58 = vld [vmem:[%s1840_s6 + $0x18] sm:$0xff] }
  0x10   : > { %s1647_s10 = scalar_lea.vmem %s1834_s0, %s1279_s30  ;;  %v1057_v59 = vld [vmem:[%s1840_s6 + $0x10] sm:$0xff] }
  0x11   : > { %v311_v1 = vld [vmem:[%s1647_s10] sm:$0xf]  ;;  %333 = vperm.xlu1 %1528, %v315_v10  }
  0x12   : > { %443 = vrot.lane.b32.xlu0 %v311_v1, %s1574_s13  ;;  %1377 = vmatprep.subr.msk.mxu0 %vm349_vm1, %v311_v1  ;;  %v1050_v47 = vld [vmem:[%s1647_s10] sm:$0xf] }
  0x13   : > { %1378 = vmatpush3.msk.msra.mxu0 %vm349_vm1, %v311_v1 }
  0x14   : > { %1380 = vmatmul.mubr.msk.f32.vlgmr.msra.gmra.mrb[0].mxu0 %vm336_vm0, %v308_v2 }
  0x15   : > { %1382 = vmatprep.mubr.msk.f32.mxu0 %vm336_vm0, %v309_v3 }
  0x16   : > { %553 = vrot.lane.b32.xlu0 %v311_v1, %s1576_s20 }
  0x18   : > { %1383 = vmatmul.mubr.msk.f32.gmra.mrb[2].mxu0 %vm336_vm0, %v310_v6 }
  0x19   : > { %1387 = vmatprep.mubr.msk.f32.mxu0 %vm336_vm0, %v1287_v7 }
  0x1a   : > { %328 = vperm.xlu0 %1529, %v314_v9   ;;  %v1052_v9 = vld [vmem:[%s1839_s5 + $0x8] sm:$0xff] }
  0x84   : > { %v444_v11 = vpop.permute.xlu0 %443 }
  0x85   : > { %1385 = vmatprep.subr.msk.mxu0 %vm349_vm1, %v444_v11 }
  0x86   : > { %1386 = vmatpush3.msk.msra.mxu0 %vm349_vm1, %v444_v11 }
  0x87   : > { %1388 = vmatmul.mubr.msk.f32.vlgmr.msra.gmra.mrb[0].mxu0 %vm336_vm0, %v1288_v12 }
  0x88   : > { %1390 = vmatprep.mubr.msk.f32.mxu0 %vm336_vm0, %v1289_v13  ;;  %v554_v14 = vpop.permute.xlu0 %553  ;;  %v319_v20 = vpop.permute.xlu1 %318  ;;  %v1053_v13 = vld [vmem:[%s1839_s5 + $0x10] sm:$0xff] }
  0x89   : > { %1393 = vmatprep.subr.msk.mxu0 %vm349_vm1, %v554_v14 }
  0x8a   : > { %1394 = vmatpush3.msk.msra.mxu0 %vm349_vm1, %v554_v14  ;;  %v1310_v14 = vld [vmem:[%s1837_s3 + $0x28] sm:$0xff] }
  0x8b   : > { %1391 = vmatmul.mubr.msk.f32.gmra.mrb[2].mxu0 %vm336_vm0, %v1290_v15 }
  0x8c   : > { %1395 = vmatprep.mubr.msk.f32.mxu0 %vm336_vm0, %v1296_v16  ;;  %v324_v21 = vpop.permute.xlu1 %323  ;;  %v1311_v16 = vld [vmem:[%s1837_s3 + $0x30] sm:$0xff] }
  0x8f   : > { %1396 = vmatmul.mubr.msk.f32.vlgmr.msra.gmra.mrb[0].mxu0 %vm336_vm0, %v1297_v17  ;;  %v1054_v17 = vld [vmem:[%s1839_s5 + $0x18] sm:$0xff] }
  0x90   : > { %1398 = vmatprep.mubr.msk.f32.mxu0 %vm336_vm0, %v1298_v18  ;;  %v334_v29 = vpop.permute.xlu1 %333  ;;  %v1312_v18 = vld [vmem:[%s1837_s3 + $0x38] sm:$0xff] }
  0x93   : > { %1399 = vmatmul.mubr.msk.f32.gmra.mrb[2].mxu0 %vm336_vm0, %v1299_v19  ;;  %v1317_v19 = vld [vmem:[%s1837_s3 + $0x40] sm:$0xff] }
  0x94   : > { %1445 = vmatprep.mubr.msk.f32.mxu0 %vm336_vm0, %v1051_v38 }
  0x99   : > { %v329_v27 = vpop.permute.xlu0 %328 }
 0x162   : > { %v1397_v22 = vpop.f32.mrb[0].mxu0 }
 0x163   : > { %v1475_v23 = vadd.f32 %v1397_v22, %v324_v21  ;;  %v635_v24 = vpop.f32.mrb[1].mxu0  ;;  %v1319_v21 = vld [vmem:[%s1837_s3 + $0x50] sm:$0xff]  ;;  %v1320_v22 = vld [vmem:[%s1837_s3 + $0x58] sm:$0xff] }
 0x164   : > { %v1476_v25 = vadd.f32 %v635_v24, %v319_v20  ;;  %v1318_v20 = vld [vmem:[%s1837_s3 + $0x48] sm:$0xff] }
 0x165   : > { %v659_v26 = vmax.f32 %v1475_v23, 0.0 }
 0x166   : > { %v658_v28 = vmax.f32 %v1476_v25, 0.0  ;;  %v1400_v30 = vpop.f32.mrb[2].mxu0 }
 0x167   : > { %664 = vst.msk [vmem:[#allocation2 + $0x8] sm:$0xff] %vm662_vm2, %v659_v26  ;;  %v1477_v31 = vadd.f32 %v1400_v30, %v334_v29  ;;  %v645_v32 = vpop.f32.mrb[3].mxu0 }
 0x168   : > { %673 = vst.msk [vmem:[#allocation2 + $0x8] sm:$0xff] %vm671_vm3, %v1577_v33  ;;  %v1478_v34 = vadd.f32 %v645_v32, %v329_v27 }
 0x169   : > { %663 = vst.msk [vmem:[#allocation2] sm:$0xff] %vm662_vm2, %v658_v28  ;;  %v661_v36 = vmax.f32 %v1477_v31, 0.0 }
 0x16a   : > { %672 = vst.msk [vmem:[#allocation2] sm:$0xff] %vm671_vm3, %v1577_v33  ;;  %v660_v37 = vmax.f32 %v1478_v34, 0.0 }
 0x16b   : > { %666 = vst.msk [vmem:[#allocation2 + $0x18] sm:$0xff] %vm662_vm2, %v661_v36 }
 0x16c   : > { %675 = vst.msk [vmem:[#allocation2 + $0x18] sm:$0xff] %vm671_vm3, %v1577_v33 }
 0x16d   : > { %665 = vst.msk [vmem:[#allocation2 + $0x10] sm:$0xff] %vm662_vm2, %v660_v37 }
 0x16e   : > { %674 = vst.msk [vmem:[#allocation2 + $0x10] sm:$0xff] %vm671_vm3, %v1577_v33 }
 0x16f   : > { %v681_v39 = vld [vmem:[#allocation2 + $0x8] sm:$0xff] }
 0x171   : > { %v680_v40 = vld [vmem:[#allocation2] sm:$0xff] }
 0x172   : > { %v1530_v41 = vpack.i.bf16 %v681_v39, %v680_v40  ;;  %v1451_v42 = vpack.c.bf16 %v681_v39, %v680_v40 }
 0x173   : > { %v683_v43 = vld [vmem:[#allocation2 + $0x18] sm:$0xff] }
 0x174   : > { %1531 = vrot.lane.b32.xlu1 %v1530_v41, %s1574_s13  ;;  %1452 = vmatprep.subr.bf16.mxu1 %v1451_v42 }
 0x175   : > { %v682_v44 = vld [vmem:[#allocation2 + $0x10] sm:$0xff]  ;;  %1454 = vmatpush3.bf16.msra.mxu1 %v1451_v42 }
 0x176   : > { %v1535_v45 = vpack.i.bf16 %v683_v43, %v682_v44  ;;  %v1455_v46 = vpack.c.bf16 %v683_v43, %v682_v44 }
 0x178   : > { %1541 = vrot.lane.b32.xlu1 %v1530_v41, %s1576_s20  ;;  %1536 = vrot.lane.b32.xlu0 %v1535_v45, %s1574_s13  ;;  %s1332_s13 = sshll.u32 %s1847_s24, 5 }
 0x179   : > { %1456 = vmatprep.subr.bf16.mxu1 %v1455_v46  ;;  %s306_s23 = scalar_lea.vmem %s1841_s7, %s1332_s13 }
 0x17a   : > { %1458 = vmatpush3.bf16.msra.mxu1 %v1455_v46 }
 0x17c   : > { %1080 = vrot.lane.b32.xlu1 %v1050_v47, %s1578_s18  ;;  %1546 = vrot.lane.b32.xlu0 %v1535_v45, %s1576_s20 }
 0x17d   : > { %1410 = vmatmul.mubr.msk.f32.vlgmr.msra.gmra.mrb[0].mxu1 %vm708_vm4, %v677_v48 }
 0x17e   : > { %1412 = vmatprep.mubr.msk.f32.mxu1 %vm708_vm4, %v678_v49 }
 0x180   : > { %695 = vperm.xlu1 %1528, %v685_v50   ;;  %690 = vperm.xlu0 %1529, %v684_v51  }
 0x181   : > { %1413 = vmatmul.mubr.msk.f32.gmra.mrb[2].mxu1 %vm708_vm4, %v679_v52 }
 0x182   : > { %1423 = vmatprep.mubr.msk.f32.mxu1 %vm708_vm4, %v1309_v53 }
 0x184   : > { %705 = vperm.xlu1 %1528, %v687_v54   ;;  %700 = vperm.xlu0 %1529, %v686_v55  }
 0x188   : > { %1066 = vperm.xlu1 %1528, %v1056_v56   ;;  %1061 = vperm.xlu0 %1529, %v1055_v57  }
 0x18c   : > { %1076 = vperm.xlu1 %1528, %v1058_v58   ;;  %1071 = vperm.xlu0 %1529, %v1057_v59  }
 0x1e6   : > { %v1532_v60 = vpop.permute.xlu1 %1531 }
 0x1e7   : > { %v1534_v61 = vunpack.i.h.bf16 %v1532_v60  ;;  %v1533_v62 = vunpack.i.l.bf16 %v1532_v60 }
 0x1e9   : > { %v1459_v63 = vpack.c.bf16 %v1534_v61, %v1533_v62 }
 0x1ea   : > { %v1542_v0 = vpop.permute.xlu1 %1541  ;;  %v1537_v1 = vpop.permute.xlu0 %1536 }
 0x1eb   : > { %v1544_v2 = vunpack.i.h.bf16 %v1542_v0  ;;  %v1543_v3 = vunpack.i.l.bf16 %v1542_v0  ;;  %v1539_v4 = vunpack.i.h.bf16 %v1537_v1  ;;  %v1538_v5 = vunpack.i.l.bf16 %v1537_v1  ;;  %1460 = vmatprep.subr.bf16.mxu1 %v1459_v63 }
 0x1ec   : > { %1462 = vmatpush3.bf16.msra.mxu1 %v1459_v63 }
 0x1ed   : > { %v1467_v6 = vpack.c.bf16 %v1544_v2, %v1543_v3  ;;  %v1463_v7 = vpack.c.bf16 %v1539_v4, %v1538_v5 }
 0x1ee   : > { %v1081_v8 = vpop.permute.xlu1 %1080  ;;  %v1547_v10 = vpop.permute.xlu0 %1546 }
 0x1ef   : > { %1464 = vmatprep.subr.bf16.mxu1 %v1463_v7  ;;  %1443 = vmatprep.subr.msk.mxu0 %vm349_vm1, %v1081_v8  ;;  %v1549_v11 = vunpack.i.h.bf16 %v1547_v10  ;;  %v1548_v12 = vunpack.i.l.bf16 %v1547_v10 }
 0x1f0   : > { %1466 = vmatpush3.bf16.msra.mxu1 %v1463_v7  ;;  %1444 = vmatpush3.msk.msra.mxu0 %vm349_vm1, %v1081_v8 }
 0x1f1   : > { %1446 = vmatmul.mubr.msk.f32.vlgmr.msra.gmra.mrb[4].mxu0 %vm336_vm0, %v1052_v9  ;;  %v1471_v15 = vpack.c.bf16 %v1549_v11, %v1548_v12  ;;  %1468 = vmatprep.subr.bf16.mxu1 %v1467_v6 }
 0x1f2   : > { %1448 = vmatprep.mubr.msk.f32.mxu0 %vm336_vm0, %v1053_v13 }
 0x1f3   : > { %1424 = vmatmul.mubr.msk.f32.vlgmr.msra.gmra.mrb[0].mxu1 %vm708_vm4, %v1310_v14 }
 0x1f4   : > { %1470 = vmatpush3.bf16.msra.mxu1 %v1467_v6  ;;  %1426 = vmatprep.mubr.msk.f32.mxu1 %vm708_vm4, %v1311_v16 }
 0x1f5   : > { %1449 = vmatmul.mubr.msk.f32.gmra.mrb[6].mxu0 %vm336_vm0, %v1054_v17  ;;  %1472 = vmatprep.subr.bf16.mxu1 %v1471_v15 }
 0x1f7   : > { %1427 = vmatmul.mubr.msk.f32.gmra.mrb[2].mxu1 %vm708_vm4, %v1312_v18 }
 0x1f8   : > { %1474 = vmatpush3.bf16.msra.mxu1 %v1471_v15  ;;  %1437 = vmatprep.mubr.msk.f32.mxu1 %vm708_vm4, %v1317_v19 }
 0x1fb   : > { %1438 = vmatmul.mubr.msk.f32.vlgmr.msra.gmra.mrb[0].mxu1 %vm708_vm4, %v1318_v20 }
 0x1fc   : > { %1440 = vmatprep.mubr.msk.f32.mxu1 %vm708_vm4, %v1319_v21 }
 0x1ff   : > { %1441 = vmatmul.mubr.msk.f32.gmra.mrb[2].mxu1 %vm708_vm4, %v1320_v22  ;;  %v696_v23 = vpop.permute.xlu1 %695  ;;  %v691_v24 = vpop.permute.xlu0 %690 }
 0x203   : > { %v706_v27 = vpop.permute.xlu1 %705  ;;  %v701_v29 = vpop.permute.xlu0 %700 }
 0x207   : > { %v1067_v31 = vpop.permute.xlu1 %1066  ;;  %v1062_v33 = vpop.permute.xlu0 %1061 }
 0x20b   : > { %v1077_v45 = vpop.permute.xlu1 %1076  ;;  %v1072_v48 = vpop.permute.xlu0 %1071 }
 0x2c4   : > { %v1447_v25 = vpop.f32.mrb[4].mxu0 }
 0x2c5   : > { %v1162_v26 = vpop.f32.mrb[5].mxu0  ;;  %v1168_v37 = vadd.f32 %v1447_v25, %v1067_v31 }
 0x2c6   : > { %v1163_v39 = vadd.f32 %v1162_v26, %v1062_v33 }
 0x2c8   : > { %v1450_v28 = vpop.f32.mrb[6].mxu0 }
 0x2c9   : > { %v1172_v30 = vpop.f32.mrb[7].mxu0  ;;  %v1178_v49 = vadd.f32 %v1450_v28, %v1077_v45 }
 0x2ca   : > { %v1173_v52 = vadd.f32 %v1172_v30, %v1072_v48 }
 0x2ce   : > { %v1439_v32 = vpop.f32.mrb[0].mxu1 }
 0x2cf   : > { %v1479_v34 = vadd.f32 %v1439_v32, %v696_v23  ;;  %v1023_v35 = vpop.f32.mrb[1].mxu1 }
 0x2d0   : > { %v1480_v36 = vadd.f32 %v1023_v35, %v691_v24 }
 0x2d1   : > { %v1047_v38 = vmax.f32 %v1479_v34, 0.0 }
 0x2d2   : > { %v1046_v40 = vmax.f32 %v1480_v36, 0.0  ;;  %v1442_v41 = vpop.f32.mrb[2].mxu1 }
 0x2d3   : > { %v1182_v42 = vadd.f32 %v1168_v37, %v1047_v38  ;;  %v1481_v43 = vadd.f32 %v1442_v41, %v706_v27  ;;  %v1033_v44 = vpop.f32.mrb[3].mxu1 }
 0x2d4   : > { %v1181_v46 = vadd.f32 %v1163_v39, %v1046_v40  ;;  %v1482_v47 = vadd.f32 %v1033_v44, %v701_v29 }
 0x2d5   : > { %v1186_v50 = vmax.f32 %v1182_v42, 0.0  ;;  %v1049_v51 = vmax.f32 %v1481_v43, 0.0 }
 0x2d6   : > { %v1185_v53 = vmax.f32 %v1181_v46, 0.0  ;;  %v1048_v54 = vmax.f32 %v1482_v47, 0.0 }
 0x2d7   : > { %1191 = vst.msk [vmem:[%s306_s23 + $0x8] sm:$0xff] %vm1189_vm5, %v1186_v50  ;;  %v1184_v55 = vadd.f32 %v1178_v49, %v1049_v51 }
 0x2d8   : > { %1190 = vst.msk [vmem:[%s306_s23] sm:$0xff] %vm1189_vm5, %v1185_v53  ;;  %v1183_v56 = vadd.f32 %v1173_v52, %v1048_v54 }
 0x2d9   : > { %v1188_v57 = vmax.f32 %v1184_v55, 0.0 }
 0x2da   : > { %v1187_v58 = vmax.f32 %v1183_v56, 0.0 }
 0x2db   : > { %1193 = vst.msk [vmem:[%s306_s23 + $0x18] sm:$0xff] %vm1189_vm5, %v1188_v57 }
 0x2dc   : > { %1192 = vst.msk [vmem:[%s306_s23 + $0x10] sm:$0xff] %vm1189_vm5, %v1187_v58 }
 0x2dd PF: > { %s17_s26 = sadd.s32 1, %s1572_s26   ;;  %s1842_s24 = smov %s1568_s25 }
 0x2de   : > { %p14_p5 = scmp.ge.s32.totalorder %s17_s26, 4   ;;  %s1843_s25 = smov %s1845_s27 }
 0x2e0   :  { %16 = sbr.rel (!%p14_p5) target bundleno = 2 (0x2), region = 86 }

</bundles_post_ra>
